<compile_context>
chip_gen: v6e
topology: v6e:2x2x1
jax: 0.10.0
libtpu: 0.0.40
codegen_flags: <defaults>
</compile_context>

<pallas_src>
import functools

import jax
import jax.numpy as jnp
from jax.experimental import pallas as pl
from jax.experimental.pallas import tpu as pltpu

HIDDEN = 128  # both fc1 and fc2 output 128 features


def _round_up(n, m):
    return ((n + m - 1) // m) * m


def actor_critic_fwd_kernel(x_ref, w1_ref, b1_ref, w2_ref, b2_ref, o_ref):
    # h = relu(x @ W1 + b1): bf16 MXU operands, f32 accumulation, f32 VPU epilogue.
    x = x_ref[...].astype(w1_ref.dtype)
    h = jnp.dot(x, w1_ref[...], preferred_element_type=jnp.float32)
    h = jnp.maximum(h + b1_ref[...], 0.0)
    # out = relu(h @ W2 + b2)
    o = jnp.dot(h.astype(w2_ref.dtype), w2_ref[...],
                preferred_element_type=jnp.float32)
    o_ref[...] = jnp.maximum(o + b2_ref[...], 0.0).astype(o_ref.dtype)


@functools.partial(jax.jit,
                   static_argnames=("block_batch", "compute_dtype", "out_dtype"))
def actor_critic_forward(x, w1, b1, w2, b2, *, block_batch=4096,
                         compute_dtype=jnp.bfloat16, out_dtype=jnp.bfloat16):
    """Two-layer MLP (ActorCritic.forward) in a single batch-gridded Pallas call."""
    batch, state_size = x.shape
    out_itemsize = jnp.dtype(out_dtype).itemsize

    # Sublane alignment for the output tile: 8 rows for 32-bit, 16 for bf16.
    align = max(8, 32 // max(out_itemsize, 1))

    # Batch tile: as large as block_batch allows (amortize per-step overhead),
    # but capped near batch/2 so grid >= 2 once the batch is big enough
    # (lets v7x's two TensorCores split the "parallel" axis).
    half = _round_up(max(1, -(-batch // 2)), align)
    tb = max(align, min(block_batch, half))
    tb = _round_up(tb, align)
    grid = (pl.cdiv(batch, tb),)  # partial last block: OOB writes are masked

    # Weights cast once to the MXU compute dtype (no-op if pre-cast); biases f32.
    w1c = w1.astype(compute_dtype)
    w2c = w2.astype(compute_dtype)
    b1f = b1.astype(jnp.float32).reshape(1, HIDDEN)
    b2f = b2.astype(jnp.float32).reshape(1, HIDDEN)

    cost = pl.CostEstimate(
        flops=2 * batch * (state_size * HIDDEN + HIDDEN * HIDDEN),
        transcendentals=0,
        bytes_accessed=(x.size * x.dtype.itemsize
                        + w1c.size * w1c.dtype.itemsize
                        + w2c.size * w2c.dtype.itemsize
                        + b1f.size * 4 + b2f.size * 4
                        + batch * HIDDEN * out_itemsize),
    )

    # Double-buffered x/out tiles + VMEM-resident weights/biases.
    vmem_bytes = (2 * tb * state_size * x.dtype.itemsize
                  + 2 * tb * HIDDEN * out_itemsize
                  + (state_size + HIDDEN) * HIDDEN
                  * jnp.dtype(compute_dtype).itemsize
                  + 2 * HIDDEN * 4)
    compiler_kwargs = dict(dimension_semantics=("parallel",))  # megacore on v7x
    if vmem_bytes > (12 << 20):
        # Only needed for very large TB on v5e (16 MiB scoped default).
        compiler_kwargs["vmem_limit_bytes"] = min(vmem_bytes * 2, 110 << 20)

    out = pl.pallas_call(
        actor_critic_fwd_kernel,
        out_shape=jax.ShapeDtypeStruct((batch, HIDDEN), out_dtype),
        grid=grid,
        in_specs=[
            pl.BlockSpec((tb, state_size), lambda i: (i, 0)),      # x: streamed tiles
            pl.BlockSpec((state_size, HIDDEN), lambda i: (0, 0)),  # W1: VMEM-resident
            pl.BlockSpec((1, HIDDEN), lambda i: (0, 0)),           # b1: VMEM-resident
            pl.BlockSpec((HIDDEN, HIDDEN), lambda i: (0, 0)),      # W2: VMEM-resident
            pl.BlockSpec((1, HIDDEN), lambda i: (0, 0)),           # b2: VMEM-resident
        ],
        out_specs=pl.BlockSpec((tb, HIDDEN), lambda i: (i, 0)),
        compiler_params=pltpu.CompilerParams(**compiler_kwargs),
        cost_estimate=cost,
    )(x, w1c, b1f, w2c, b2f)
    return out


def init_params(key, state_size, action_size):
    """Deterministic PyTorch-style (Kaiming-uniform-ish) init for all layers.

    policy_head / value_head params are created for shape fidelity with the
    module's __init__, even though forward() does not use them.
    """
    # TODO(synk): when .policy()/.value() are needed, fuse Wp/Wv into a wider
    # (128, 128 + action + 1) second matmul (pad N to 256) and emit all heads
    # from this kernel; forward() only returns hidden activations.
    def linear_init(k, fan_in, fan_out):
        kw, kb = jax.random.split(k)
        bound = 1.0 / jnp.sqrt(jnp.float32(fan_in))
        w = jax.random.uniform(kw, (fan_in, fan_out), jnp.float32, -bound, bound)
        b = jax.random.uniform(kb, (1, fan_out), jnp.float32, -bound, bound)
        return w, b

    k1, k2, k3, k4 = jax.random.split(key, 4)
    w1, b1 = linear_init(k1, state_size, HIDDEN)
    w2, b2 = linear_init(k2, HIDDEN, HIDDEN)
    wp, bp = linear_init(k3, HIDDEN, action_size)   # policy_head (unused in forward)
    wv, bv = linear_init(k4, HIDDEN, 1)             # value_head (unused in forward)
    return dict(w1=w1, b1=b1, w2=w2, b2=b2, wp=wp, bp=bp, wv=wv, bv=bv)


def reference_forward(x, p, compute_dtype=jnp.bfloat16):
    """Pure-JAX reference matching the kernel's compute path (bf16 MXU, f32 acc)."""
    cd = compute_dtype
    h = jnp.dot(x.astype(cd), p["w1"].astype(cd),
                preferred_element_type=jnp.float32)
    h = jnp.maximum(h + p["b1"].reshape(1, -1), 0.0)
    o = jnp.dot(h.astype(cd), p["w2"].astype(cd),
                preferred_element_type=jnp.float32)
    return jnp.maximum(o + p["b2"].reshape(1, -1), 0.0)


if __name__ == "__main__":
    batch, state_size, action_size = 2, 16, 4

    key = jax.random.PRNGKey(0)
    kx, kp = jax.random.split(key)
    x = jax.random.normal(kx, (batch, state_size), jnp.float32)
    params = init_params(kp, state_size, action_size)

    # Small-batch path (batch=2 -> single partial (16, state) tile, bf16 output).
    out = actor_critic_forward(x, params["w1"], params["b1"],
                               params["w2"], params["b2"])
    out = jax.block_until_ready(out)
    ref = reference_forward(x, params)
    assert out.shape == (batch, HIDDEN)
    assert out.dtype == jnp.bfloat16
    assert jnp.allclose(out.astype(jnp.float32), ref, atol=2e-2, rtol=2e-2), \
        "mismatch vs reference (bf16 out)"

    # Multi-tile grid with a masked partial last block: batch=20, tb=16 -> grid=(2,).
    xb = jax.random.normal(jax.random.PRNGKey(1), (20, state_size), jnp.float32)
    out_b = actor_critic_forward(xb, params["w1"], params["b1"],
                                 params["w2"], params["b2"], block_batch=16)
    out_b = jax.block_until_ready(out_b)
    ref_b = reference_forward(xb, params)
    assert out_b.shape == (20, HIDDEN)
    assert jnp.allclose(out_b.astype(jnp.float32), ref_b, atol=2e-2, rtol=2e-2), \
        "mismatch (tiled, partial last block)"

    # f32-output path (align=8), tb=8 -> grid=(3,) with a 4-row partial block.
    out_f = actor_critic_forward(xb, params["w1"], params["b1"],
                                 params["w2"], params["b2"],
                                 block_batch=8, out_dtype=jnp.float32)
    out_f = jax.block_until_ready(out_f)
    assert out_f.shape == (20, HIDDEN) and out_f.dtype == jnp.float32
    assert jnp.allclose(out_f, ref_b, atol=2e-2, rtol=2e-2), "mismatch (f32 out)"

    print("KERNEL_OK")
</pallas_src>

<mosaic_0001>
module attributes {stable_mosaic.version = 11 : i64} {
  func.func @actor_critic_fwd_kernel(%arg0: i32, %arg1: memref<16x16xf32, #tpu.memory_space<vmem>>, %arg2: memref<16x128xbf16, #tpu.memory_space<vmem>>, %arg3: memref<1x128xf32, #tpu.memory_space<vmem>>, %arg4: memref<128x128xbf16, #tpu.memory_space<vmem>>, %arg5: memref<1x128xf32, #tpu.memory_space<vmem>>, %arg6: memref<16x128xbf16, #tpu.memory_space<vmem>>) attributes {dimension_semantics = [#tpu.dimension_semantics<parallel>], iteration_bounds = array<i64: 1>, scalar_prefetch = 0 : i64, scratch_operands = 0 : i64, tpu.core_type = #tpu.core_type<tc>, window_params = [{transform_indices = @transform_0, window_bounds = array<i64: 16, 16>}, {pipeline_mode = #tpu.pipeline_mode<synchronous>, transform_indices = @transform_1, window_bounds = array<i64: 16, 128>}, {pipeline_mode = #tpu.pipeline_mode<synchronous>, transform_indices = @transform_2, window_bounds = array<i64: 1, 128>}, {pipeline_mode = #tpu.pipeline_mode<synchronous>, transform_indices = @transform_3, window_bounds = array<i64: 128, 128>}, {pipeline_mode = #tpu.pipeline_mode<synchronous>, transform_indices = @transform_4, window_bounds = array<i64: 1, 128>}, {transform_indices = @transform_5, window_bounds = array<i64: 16, 128>}]} {
    %c0 = arith.constant 0 : index
    %c0_0 = arith.constant 0 : index
    %0 = vector.load %arg1[%c0, %c0_0] : memref<16x16xf32, #tpu.memory_space<vmem>>, vector<16x16xf32>
    %1 = arith.truncf %0 : vector<16x16xf32> to vector<16x16xbf16>
    %c0_1 = arith.constant 0 : index
    %c0_2 = arith.constant 0 : index
    %2 = vector.load %arg2[%c0_1, %c0_2] : memref<16x128xbf16, #tpu.memory_space<vmem>>, vector<16x128xbf16>
    %cst = arith.constant dense<0.000000e+00> : vector<16x128xf32>
    %3 = tpu.matmul %1, %2, %cst {dimension_numbers = #tpu.dot_dimension_numbers<[1], [0], [0], [1], [0, 0, 1, 1], [], []>} : vector<16x16xbf16>, vector<16x128xbf16>, vector<16x128xf32> -> vector<16x128xf32>
    %c0_3 = arith.constant 0 : index
    %c0_4 = arith.constant 0 : index
    %4 = vector.load %arg3[%c0_3, %c0_4] : memref<1x128xf32, #tpu.memory_space<vmem>>, vector<1x128xf32>
    %5 = vector.broadcast %4 : vector<1x128xf32> to vector<16x128xf32>
    %6 = arith.addf %3, %5 : vector<16x128xf32>
    %cst_5 = arith.constant 0.000000e+00 : f32
    %7 = vector.broadcast %cst_5 : f32 to vector<16x128xf32>
    %8 = arith.maximumf %6, %7 : vector<16x128xf32>
    %9 = arith.truncf %8 : vector<16x128xf32> to vector<16x128xbf16>
    %c0_6 = arith.constant 0 : index
    %c0_7 = arith.constant 0 : index
    %10 = vector.load %arg4[%c0_6, %c0_7] : memref<128x128xbf16, #tpu.memory_space<vmem>>, vector<128x128xbf16>
    %cst_8 = arith.constant dense<0.000000e+00> : vector<16x128xf32>
    %11 = tpu.matmul %9, %10, %cst_8 {dimension_numbers = #tpu.dot_dimension_numbers<[1], [0], [0], [1], [0, 0, 1, 1], [], []>} : vector<16x128xbf16>, vector<128x128xbf16>, vector<16x128xf32> -> vector<16x128xf32>
    %c0_9 = arith.constant 0 : index
    %c0_10 = arith.constant 0 : index
    %12 = vector.load %arg5[%c0_9, %c0_10] : memref<1x128xf32, #tpu.memory_space<vmem>>, vector<1x128xf32>
    %13 = vector.broadcast %12 : vector<1x128xf32> to vector<16x128xf32>
    %14 = arith.addf %11, %13 : vector<16x128xf32>
    %cst_11 = arith.constant 0.000000e+00 : f32
    %15 = vector.broadcast %cst_11 : f32 to vector<16x128xf32>
    %16 = arith.maximumf %14, %15 : vector<16x128xf32>
    %17 = arith.truncf %16 : vector<16x128xf32> to vector<16x128xbf16>
    %c0_12 = arith.constant 0 : index
    %c0_13 = arith.constant 0 : index
    %18 = vector.load %arg6[%c0_12, %c0_13] : memref<16x128xbf16, #tpu.memory_space<vmem>>, vector<16x128xbf16>
    tpu.vector_store %arg6[%c0_12, %c0_13], %17 {strides = array<i32>} : memref<16x128xbf16, #tpu.memory_space<vmem>>, vector<16x128xbf16>,
    return
  }
  func.func @transform_0(%arg0: i32) -> (i32, i32) {
    %c0_i32 = arith.constant 0 : i32
    %c0_i32_0 = arith.constant 0 : i32
    return %arg0, %c0_i32 : i32, i32
  }
  func.func @transform_1(%arg0: i32) -> (i32, i32) {
    %c0_i32 = arith.constant 0 : i32
    %c0_i32_0 = arith.constant 0 : i32
    %c0_i32_1 = arith.constant 0 : i32
    return %c0_i32, %c0_i32_0 : i32, i32
  }
  func.func @transform_2(%arg0: i32) -> (i32, i32) {
    %c0_i32 = arith.constant 0 : i32
    %c0_i32_0 = arith.constant 0 : i32
    %c0_i32_1 = arith.constant 0 : i32
    return %c0_i32, %c0_i32_0 : i32, i32
  }
  func.func @transform_3(%arg0: i32) -> (i32, i32) {
    %c0_i32 = arith.constant 0 : i32
    %c0_i32_0 = arith.constant 0 : i32
    %c0_i32_1 = arith.constant 0 : i32
    return %c0_i32, %c0_i32_0 : i32, i32
  }
  func.func @transform_4(%arg0: i32) -> (i32, i32) {
    %c0_i32 = arith.constant 0 : i32
    %c0_i32_0 = arith.constant 0 : i32
    %c0_i32_1 = arith.constant 0 : i32
    return %c0_i32, %c0_i32_0 : i32, i32
  }
  func.func @transform_5(%arg0: i32) -> (i32, i32) {
    %c0_i32 = arith.constant 0 : i32
    %c0_i32_0 = arith.constant 0 : i32
    return %arg0, %c0_i32 : i32, i32
  }
}

</mosaic_0001>

<bundles_post_ra>
// kernel: actor_critic_forward.1
= control target key start
LH: loop header
LB: loop body
LE: loop exit
PB: predicated region body
PF: predicated region fallthrough
CT: control target
= control target key end

     0   :  { %10 = vsyncpa [#allocation3], 0  ;;  %v376_v1 = vmov 0.0   ;;  %vm377_vm0 = vmmov 0   ;;  %vm40_vm1 = vcmask 130048   ;;  %v208_v25 = vlaneseq  ;;  %s454_s0 = inlined_call_operand.vmem [shape: f32[2,16], index: 0, kind: input, shape index: {}]   ;;  %s455_s1 = inlined_call_operand.vmem [shape: bf16[16,128], index: 1, kind: input, shape index: {}]   ;;  %s456_s2 = inlined_call_operand.vmem [shape: f32[1,128], index: 2, kind: input, shape index: {}]   ;;  %s457_s3 = inlined_call_operand.vmem [shape: bf16[128,128], index: 3, kind: input, shape index: {}]   ;;  %s458_s4 = inlined_call_operand.vmem [shape: f32[1,128], index: 4, kind: input, shape index: {}]   ;;  %s459_s5 = inlined_call_operand.hbm [shape: bf16[2,128], index: 5, kind: output, shape index: {}]  }
   0x1   :  { %v345_v0 = vld [vmem:[%s455_s1] sm:$0xff]   ;;  %313 = vmatprep.subr.bf16.mxu0 %v376_v1  ;;  %v23_v3 = vld [vmem:[%s454_s0 + $0x8] sm:$0xff]  ;;  %319 = vmatprep.subr.bf16.mxu1 %v376_v1  ;;  %v346_v5 = vld [vmem:[%s457_s3 + $0x38] sm:$0xff]   ;;  %v378_v23 = vmov 1966171168  }
   0x2   :  { %v22_v2 = vld [vmem:[%s454_s0] sm:$0xff]  ;;  %314 = vmatpush3.bf16.msra.mxu0 %v345_v0  ;;  %315 = vmatprep.mubr.msk.bf16.mxu0 %vm377_vm0, %v376_v1  ;;  %v347_v6 = vld [vmem:[%s457_s3 + $0x30] sm:$0xff]   ;;  %v348_v7 = vld [vmem:[%s457_s3 + $0x28] sm:$0xff]   ;;  %v206_v24 = vunpack.c.l.s4 %v378_v23  ;;  %v209_v31 = vshrl.u32 %v208_v25, 7 }
   0x3   :  { %v24_v4 = vpack.c.bf16 %v23_v3, %v22_v2  ;;  %335 = vmatprep.mubr.msk.bf16.mxu1 %vm377_vm0, %v376_v1  ;;  %320 = vmatpush3.bf16.msra.mxu1 %v346_v5  ;;  %v349_v8 = vld [vmem:[%s457_s3 + $0x20] sm:$0xff]   ;;  %v350_v9 = vld [vmem:[%s457_s3 + $0x18] sm:$0xff]   ;;  %v351_v10 = vld [vmem:[%s457_s3 + $0x10] sm:$0xff]  }
   0x4   :  { %321 = vmatprep.subr.bf16.mxu1 %v376_v1  ;;  %v352_v11 = vld [vmem:[%s457_s3 + $0x8] sm:$0xff]   ;;  %v353_v12 = vld [vmem:[%s457_s3] sm:$0xff]   ;;  %v207_v30 = vunpack.c.0.s8 %v206_v24 }
   0x5   :  { %316 = vmatmul.mubr.msk.bf16.vlgmr.msra.gmra.mxu0 %vm40_vm1, %v24_v4  ;;  %v285_v13 = vld [vmem:[%s456_s2] ss:$0 sm:$0xff] }
   0x6   :  { %v288_v26 = vld [vmem:[%s458_s4] ss:$0 sm:$0xff]  ;;  %v210_v37 = vsub.s32 %v207_v30, %v209_v31 }
   0x7   :  { %322 = vmatpush3.bf16.msra.mxu1 %v347_v6 }
   0x8   :  { %323 = vmatprep.subr.bf16.mxu1 %v376_v1 }
   0xb   :  { %324 = vmatpush3.bf16.msra.mxu1 %v348_v7 }
   0xc   :  { %325 = vmatprep.subr.bf16.mxu1 %v376_v1 }
   0xf   :  { %326 = vmatpush3.bf16.msra.mxu1 %v349_v8 }
  0x10   :  { %327 = vmatprep.subr.bf16.mxu1 %v376_v1 }
  0x13   :  { %328 = vmatpush3.bf16.msra.mxu1 %v350_v9 }
  0x14   :  { %329 = vmatprep.subr.bf16.mxu1 %v376_v1 }
  0x17   :  { %330 = vmatpush3.bf16.msra.mxu1 %v351_v10 }
  0x18   :  { %331 = vmatprep.subr.bf16.mxu1 %v376_v1 }
  0x1b   :  { %332 = vmatpush3.bf16.msra.mxu1 %v352_v11 }
  0x1c   :  { %333 = vmatprep.subr.bf16.mxu1 %v376_v1 }
  0x1f   :  { %334 = vmatpush3.bf16.msra.mxu1 %v353_v12 }
  0xc5   :  { %v78_v14 = vpop.f32.mrf.mxu0 }
  0xc6   :  { %v79_v16 = vadd.f32 %v285_v13, %v78_v14 }
  0xc7   :  { %v317_v15 = vpop.f32.mrf.mxu0 }
  0xc8   :  { %v85_v20 = vmax.f32 %v79_v16, 0.0 }
  0xc9   :  { %v81_v17 = vpop.f32.mrf.mxu0 }
  0xca   :  { %v82_v18 = vadd.f32 %v285_v13, %v81_v17 }
  0xcb   :  { %v318_v19 = vpop.f32.mrf.mxu0 }
  0xcc   :  { %v86_v21 = vmax.f32 %v82_v18, 0.0 }
  0xce   :  { %v87_v22 = vpack.c.bf16 %v86_v21, %v85_v20 }
  0xd0   :  { %336 = vmatmul.mubr.bf16.vlgmr.msra.gmra.mxu1 %v87_v22 }
 0x190   :  { %v193_v27 = vpop.f32.mrf.mxu1 }
 0x191   :  { %v194_v29 = vadd.f32 %v288_v26, %v193_v27 }
 0x192   :  { %v337_v28 = vpop.f32.mrf.mxu1 }
 0x193   :  { %v200_v35 = vmax.f32 %v194_v29, 0.0 }
 0x194   :  { %v196_v32 = vpop.f32.mrf.mxu1 }
 0x195   :  { %v197_v33 = vadd.f32 %v288_v26, %v196_v32 }
 0x196   :  { %v338_v34 = vpop.f32.mrf.mxu1 }
 0x197   :  { %v201_v36 = vmax.f32 %v197_v33, 0.0 }
 0x199   :  { %v202_v38 = vpack.c.bf16 %v201_v36, %v200_v35  ;;  %v297_v39 = vpack.c.bf16 %v201_v36, %v201_v36 }
 0x19b   :  { %v211_v40 = vrot.slane %v202_v38, %v210_v37  ;;  %v218_v41 = vrot.slane %v297_v39, %v210_v37 }
 0x19d   :  { %v219_v42 = vcombine.high %v211_v40, %v211_v40  ;;  %v220_v43 = vcombine.high %v218_v41, %v218_v41  ;;  %v227_v44 = vrot.slane %v211_v40, %v210_v37  ;;  %v234_v45 = vrot.slane %v218_v41, %v210_v37  ;;  %298 = vst.sshfl [vmem:[#allocation2] sm:$0x1 pattern:$0x73625140] %v211_v40 }
 0x19e   :  { %300 = vst.sshfl [vmem:[#allocation2 + $0x4] sm:$0x1 pattern:$0x73625140] %v218_v41 }
 0x19f   :  { %v241_v46 = vrot.slane %v219_v42, %v210_v37  ;;  %v248_v47 = vrot.slane %v220_v43, %v210_v37  ;;  %v249_v48 = vcombine.high %v227_v44, %v227_v44  ;;  %v250_v49 = vcombine.high %v234_v45, %v234_v45  ;;  %299 = vst.sshfl [vmem:[#allocation2 + $0x1] sm:$0x1 pattern:$0x73625140] %v219_v42 }
 0x1a0   :  { %301 = vst.sshfl [vmem:[#allocation2 + $0x5] sm:$0x1 pattern:$0x73625140] %v220_v43 }
 0x1a1   :  { %v251_v50 = vcombine.high %v241_v46, %v241_v46  ;;  %v252_v51 = vcombine.high %v248_v47, %v248_v47  ;;  %263 = vst [vmem:[#allocation2 + $0x2] sm:$0x1] %v249_v48  ;;  %267 = vst [vmem:[#allocation2 + $0x6] sm:$0x1] %v250_v49 }
 0x1a3   :  { %264 = vst [vmem:[#allocation2 + $0x3] sm:$0x1] %v251_v50  ;;  %268 = vst [vmem:[#allocation2 + $0x7] sm:$0x1] %v252_v51 }
 0x1a4   :  { %273 = vsyncadd [#allocation3], 112  ;;  %s379_s2 = smov [#allocation2]  }
 0x1a5   :  { %s274_s4 = sshll.u32 %s379_s2, 4  ;;  %s275_s4 = int_to_ptr.vmem [resolvable:$true] %s274_s4 }
 0x1a6   :  { %s354_s16 = scalar_lea.vmem %s275_s4, 16  ;;  %s358_s17 = scalar_lea.vmem %s275_s4, 128 }
 0x1a7   :  { %p355_p0 = scmp.ne.s32.totalorder %s275_s4, %s354_s16  ;;  %p359_p1 = scmp.lt.s32.totalorder %s275_s4, %s275_s4 }
 0x1a8   :  { %p360_p2 = scmp.lt.s32.totalorder %s358_s17, %s354_s16 }
 0x1aa   :  { %p361_p3 = por %p360_p2, %p359_p1 }
 0x1ac   :  { %p362_p4 = pnand %p361_p3, %p355_p0 }
 0x1ae   :  { %365 = shalt.err (!%p362_p4)
}
 0x1af   :  { %s380_s18 = smov 16   ;;  %s381_s19 = smov 1  }
 0x1b0   :  { %280 = dma.vmem_to_hbm [thread:$0]  %s275_s4, 16, %s459_s5, [#allocation3], %s380_s18, %s380_s18, %s381_s19  }
 0x1b1   :  { %374 = dma.done.wait [#allocation3], 128  }
 0x1b2   :  { %375 = vsyncadd [#allocation3], 4294967168 }
 0x1b3   :  { %284 = vsyncpa [#allocation3], 1 }

</bundles_post_ra>
